<compile_context>
chip_gen: v6e
topology: v6e:2x2x1
jax: 0.10.0
libtpu: 0.0.40
codegen_flags: <defaults>
</compile_context>

<pallas_src>
import math
import functools

import jax
import jax.numpy as jnp
from jax.experimental import pallas as pl
from jax.experimental.pallas import tpu as pltpu

_LN_EPS = 1e-6
_SQRT_2_OVER_PI = 0.7978845608028654


def _gelu_tanh(x):
    # TODO(synk): PyTorch F.gelu defaults to the exact erf formulation; the tanh
    # approximation is used here (erf has no guaranteed Mosaic lowering).
    return 0.5 * x * (1.0 + jnp.tanh(_SQRT_2_OVER_PI * (x + 0.044715 * (x * x * x))))


def _layernorm(x, w, b):
    mu = jnp.mean(x, axis=-1, keepdims=True)
    xc = x - mu
    var = jnp.mean(xc * xc, axis=-1, keepdims=True)
    return xc * jax.lax.rsqrt(var + _LN_EPS) * w + b


def _block_kernel(x_ref,
                  anw_ref, anb_ref,
                  wqkv_ref, bqkv_ref, wo_ref, bo_ref,
                  fnw_ref, fnb_ref,
                  w1_ref, b1_ref, w2_ref, b2_ref,
                  enw_ref, enb_ref,
                  out_ref, *maybe_probs_ref,
                  num_heads, head_dim, emit_probs, apply_final_norm):
    x = x_ref[0].astype(jnp.float32)                      # (S, H)
    S, H = x.shape

    # ---------------- attention branch ----------------
    xn = _layernorm(x, anw_ref[...], anb_ref[...])

    # Fused QKV projection: (S, H) @ (H, 3H)
    qkv = jnp.dot(xn, wqkv_ref[...], preferred_element_type=jnp.float32) + bqkv_ref[...]

    scale = 1.0 / math.sqrt(head_dim)
    if emit_probs:
        probs_ref = maybe_probs_ref[0]

    # Per-head attention with (a) transpose-free QK^T via dot_general contracting
    # dim 1 of both operands and (b) per-head accumulation of the output projection
    # against row-slices of W_out (avoids the lane-axis concat).
    acc = jnp.zeros((S, H), jnp.float32)
    for h in range(num_heads):
        lo = h * head_dim
        qh = qkv[:, lo:lo + head_dim]
        kh = qkv[:, H + lo:H + lo + head_dim]
        vh = qkv[:, 2 * H + lo:2 * H + lo + head_dim]

        scores = jax.lax.dot_general(
            qh, kh, dimension_numbers=(((1,), (1,)), ((), ())),
            preferred_element_type=jnp.float32) * scale       # (S, S)
        scores = scores - jnp.max(scores, axis=-1, keepdims=True)
        e = jnp.exp(scores)
        probs = e * pl.reciprocal(jnp.sum(e, axis=-1, keepdims=True), approx=True)

        if emit_probs:
            probs_ref[0, h] = probs.astype(probs_ref.dtype)

        ctx_h = jnp.dot(probs, vh, preferred_element_type=jnp.float32)       # (S, dh)
        acc = acc + jnp.dot(ctx_h, wo_ref[lo:lo + head_dim, :],
                            preferred_element_type=jnp.float32)

    x = x + acc + bo_ref[...]                             # residual 1

    # ---------------- MLP branch ----------------
    xn2 = _layernorm(x, fnw_ref[...], fnb_ref[...])
    hmid = jnp.dot(xn2, w1_ref[...], preferred_element_type=jnp.float32) + b1_ref[...]
    hmid = _gelu_tanh(hmid)
    mlp = jnp.dot(hmid, w2_ref[...], preferred_element_type=jnp.float32) + b2_ref[...]
    x = x + mlp                                           # residual 2

    if apply_final_norm:
        # Final encoder LayerNorm fused into the last block.
        x = _layernorm(x, enw_ref[...], enb_ref[...])

    out_ref[0] = x.astype(out_ref.dtype)


def _block_forward(x, params, encoder_norm, *, num_heads, vis, apply_final_norm):
    B, S, H = x.shape
    assert H % num_heads == 0
    head_dim = H // num_heads
    (anw, anb, wq, bq, wk, bk, wv, bv, wo, bo, fnw, fnb, w1, b1, w2, b2) = params
    M = w1.shape[1]

    # Fuse the three QKV projections into a single matmul.
    wqkv = jnp.concatenate([wq, wk, wv], axis=1)          # (H, 3H)
    bqkv = jnp.concatenate([bq, bk, bv], axis=1)          # (1, 3H)

    if apply_final_norm:
        enw, enb = encoder_norm
    else:
        enw = jnp.ones((1, H), x.dtype)
        enb = jnp.zeros((1, H), x.dtype)

    kernel = functools.partial(_block_kernel, num_heads=num_heads,
                               head_dim=head_dim, emit_probs=vis,
                               apply_final_norm=apply_final_norm)

    x_spec = pl.BlockSpec((1, S, H), lambda b: (b, 0, 0))
    vecH = pl.BlockSpec((1, H), lambda b: (0, 0))
    vec3H = pl.BlockSpec((1, 3 * H), lambda b: (0, 0))
    vecM = pl.BlockSpec((1, M), lambda b: (0, 0))
    matH3H = pl.BlockSpec((H, 3 * H), lambda b: (0, 0))
    matHH = pl.BlockSpec((H, H), lambda b: (0, 0))
    matHM = pl.BlockSpec((H, M), lambda b: (0, 0))
    matMH = pl.BlockSpec((M, H), lambda b: (0, 0))

    in_specs = [x_spec,
                vecH, vecH,
                matH3H, vec3H, matHH, vecH,
                vecH, vecH,
                matHM, vecM, matMH, vecH,
                vecH, vecH]

    out_shapes = [jax.ShapeDtypeStruct((B, S, H), x.dtype)]
    out_specs = [x_spec]
    if vis:
        out_shapes.append(jax.ShapeDtypeStruct((B, num_heads, S, S), jnp.float32))
        out_specs.append(pl.BlockSpec((1, num_heads, S, S), lambda b: (b, 0, 0, 0)))

    # advisory cost hint for XLA scheduling of the surrounding graph
    flops = (6 * B * S * H * H                    # fused QKV projection
             + 2 * B * S * H * H                  # output projection
             + 4 * B * num_heads * S * S * head_dim   # scores + context
             + 4 * B * S * H * M)                 # MLP
    transcendentals = B * num_heads * S * S + B * S * M
    bytes_accessed = 4 * (x.size
                          + wqkv.size + bqkv.size + wo.size + bo.size
                          + anw.size + anb.size + fnw.size + fnb.size
                          + w1.size + b1.size + w2.size + b2.size
                          + 2 * H
                          + B * S * H
                          + (B * num_heads * S * S if vis else 0))

    outs = pl.pallas_call(
        kernel,
        out_shape=tuple(out_shapes),
        grid_spec=pltpu.PrefetchScalarGridSpec(
            num_scalar_prefetch=0,
            grid=(B,),
            in_specs=in_specs,
            out_specs=out_specs),
        compiler_params=pltpu.CompilerParams(
            dimension_semantics=("parallel",),
            vmem_limit_bytes=64 * 1024 * 1024),
        cost_estimate=pl.CostEstimate(flops=int(flops),
                                      transcendentals=int(transcendentals),
                                      bytes_accessed=int(bytes_accessed)),
    )(x, anw, anb, wqkv, bqkv, wo, bo, fnw, fnb, w1, b1, w2, b2, enw, enb)

    if vis:
        return outs[0], outs[1]
    return outs[0], None


def _encoder_norm_kernel(x_ref, w_ref, b_ref, o_ref):
    o_ref[0] = _layernorm(x_ref[0].astype(jnp.float32),
                          w_ref[...], b_ref[...]).astype(o_ref.dtype)


def _encoder_norm_forward(x, w, b):
    # Only used in the degenerate num_layers == 0 case (otherwise the final norm
    # is fused into the last block kernel).
    B, S, H = x.shape
    return pl.pallas_call(
        _encoder_norm_kernel,
        out_shape=jax.ShapeDtypeStruct((B, S, H), x.dtype),
        grid_spec=pltpu.PrefetchScalarGridSpec(
            num_scalar_prefetch=0,
            grid=(B,),
            in_specs=[pl.BlockSpec((1, S, H), lambda i: (i, 0, 0)),
                      pl.BlockSpec((1, H), lambda i: (0, 0)),
                      pl.BlockSpec((1, H), lambda i: (0, 0))],
            out_specs=pl.BlockSpec((1, S, H), lambda i: (i, 0, 0))),
        compiler_params=pltpu.CompilerParams(
            dimension_semantics=("parallel",)),
    )(x, w, b)


def encoder_forward(x, layer_params, encoder_norm, *, num_heads, vis=True):
    """Mirrors Encoder.forward: returns (encoded, [attn_weights per layer])."""
    attn_weights = []
    h = x
    n_layers = len(layer_params)
    if n_layers == 0:
        enc_w, enc_b = encoder_norm
        return _encoder_norm_forward(h, enc_w, enc_b), attn_weights

    for li, params in enumerate(layer_params):
        is_last = li == n_layers - 1
        h, w = _block_forward(h, params, encoder_norm, num_heads=num_heads,
                              vis=vis, apply_final_norm=is_last)
        if vis:
            attn_weights.append(w)
    return h, attn_weights


# ----------------------------- pure-JAX reference -----------------------------
def _reference_encoder(x, layer_params, encoder_norm, num_heads):
    def ln(t, w, b):
        mu = t.mean(-1, keepdims=True)
        tc = t - mu
        var = (tc * tc).mean(-1, keepdims=True)
        return tc / jnp.sqrt(var + _LN_EPS) * w + b

    B, S, H = x.shape
    dh = H // num_heads
    weights_all = []
    for p in layer_params:
        (anw, anb, wq, bq, wk, bk, wv, bv, wo, bo, fnw, fnb, w1, b1, w2, b2) = p
        h = x
        xn = ln(x, anw, anb)
        q = xn @ wq + bq
        k = xn @ wk + bk
        v = xn @ wv + bv

        def split(t):
            return t.reshape(B, S, num_heads, dh).transpose(0, 2, 1, 3)

        qh, kh, vh = split(q), split(k), split(v)
        sc = jnp.einsum('bhqd,bhkd->bhqk', qh, kh) / math.sqrt(dh)
        pr = jax.nn.softmax(sc, axis=-1)
        ctx = jnp.einsum('bhqk,bhkd->bhqd', pr, vh).transpose(0, 2, 1, 3).reshape(B, S, H)
        attn_out = ctx @ wo + bo
        x = attn_out + h
        h = x
        xn2 = ln(x, fnw, fnb)
        mlp = _gelu_tanh(xn2 @ w1 + b1) @ w2 + b2
        x = mlp + h
        weights_all.append(pr)
    enc_w, enc_b = encoder_norm
    return ln(x, enc_w, enc_b), weights_all


if __name__ == "__main__":
    # Small, module-consistent shapes: batch=2, seq=8, hidden=32, heads=4,
    # mlp_dim=64, num_layers=2.
    B, S, H, NH, MLP, LAYERS = 2, 8, 32, 4, 64, 2

    key = jax.random.PRNGKey(0)
    keys = jax.random.split(key, LAYERS + 3)

    def make_layer(k):
        ks = jax.random.split(k, 16)
        s = 0.05
        anw = jnp.ones((1, H), jnp.float32) + 0.1 * jax.random.normal(ks[0], (1, H))
        anb = 0.05 * jax.random.normal(ks[1], (1, H))
        wq = s * jax.random.normal(ks[2], (H, H))
        bq = s * jax.random.normal(ks[3], (1, H))
        wk = s * jax.random.normal(ks[4], (H, H))
        bk = s * jax.random.normal(ks[5], (1, H))
        wv = s * jax.random.normal(ks[6], (H, H))
        bv = s * jax.random.normal(ks[7], (1, H))
        wo = s * jax.random.normal(ks[8], (H, H))
        bo = s * jax.random.normal(ks[9], (1, H))
        fnw = jnp.ones((1, H), jnp.float32) + 0.1 * jax.random.normal(ks[10], (1, H))
        fnb = 0.05 * jax.random.normal(ks[11], (1, H))
        w1 = s * jax.random.normal(ks[12], (H, MLP))
        b1 = s * jax.random.normal(ks[13], (1, MLP))
        w2 = s * jax.random.normal(ks[14], (MLP, H))
        b2 = s * jax.random.normal(ks[15], (1, H))
        return (anw, anb, wq, bq, wk, bk, wv, bv, wo, bo, fnw, fnb, w1, b1, w2, b2)

    x = jax.random.normal(keys[0], (B, S, H), jnp.float32)
    layers = [make_layer(keys[1 + i]) for i in range(LAYERS)]
    enc_norm = (jnp.ones((1, H), jnp.float32) + 0.1 * jax.random.normal(keys[-2], (1, H)),
                0.05 * jax.random.normal(keys[-1], (1, H)))

    encoded, attn_w = encoder_forward(x, layers, enc_norm, num_heads=NH, vis=True)
    jax.block_until_ready(encoded)
    for w in attn_w:
        jax.block_until_ready(w)

    ref_encoded, ref_w = _reference_encoder(x, layers, enc_norm, NH)

    assert encoded.shape == (B, S, H)
    assert len(attn_w) == LAYERS and attn_w[0].shape == (B, NH, S, S)
    assert jnp.allclose(encoded, ref_encoded, atol=2e-3, rtol=2e-3), \
        float(jnp.max(jnp.abs(encoded - ref_encoded)))
    for wk_, wr_ in zip(attn_w, ref_w):
        assert jnp.allclose(wk_, wr_, atol=2e-3, rtol=2e-3)

    print("KERNEL_OK")
</pallas_src>

<mosaic_0001>
module attributes {stable_mosaic.version = 11 : i64} {
  func.func @_block_kernel(%arg0: i32, %arg1: memref<1x8x32xf32, #tpu.memory_space<vmem>>, %arg2: memref<1x32xf32, #tpu.memory_space<vmem>>, %arg3: memref<1x32xf32, #tpu.memory_space<vmem>>, %arg4: memref<32x96xf32, #tpu.memory_space<vmem>>, %arg5: memref<1x96xf32, #tpu.memory_space<vmem>>, %arg6: memref<32x32xf32, #tpu.memory_space<vmem>>, %arg7: memref<1x32xf32, #tpu.memory_space<vmem>>, %arg8: memref<1x32xf32, #tpu.memory_space<vmem>>, %arg9: memref<1x32xf32, #tpu.memory_space<vmem>>, %arg10: memref<32x64xf32, #tpu.memory_space<vmem>>, %arg11: memref<1x64xf32, #tpu.memory_space<vmem>>, %arg12: memref<64x32xf32, #tpu.memory_space<vmem>>, %arg13: memref<1x32xf32, #tpu.memory_space<vmem>>, %arg14: memref<1x32xf32, #tpu.memory_space<vmem>>, %arg15: memref<1x32xf32, #tpu.memory_space<vmem>>, %arg16: memref<1x8x32xf32, #tpu.memory_space<vmem>>, %arg17: memref<1x4x8x8xf32, #tpu.memory_space<vmem>>) attributes {dimension_semantics = [#tpu.dimension_semantics<parallel>], iteration_bounds = array<i64: 2>, scalar_prefetch = 0 : i64, scratch_operands = 0 : i64, tpu.core_type = #tpu.core_type<tc>, window_params = [{transform_indices = @transform_0, window_bounds = array<i64: 1, 8, 32>}, {pipeline_mode = #tpu.pipeline_mode<synchronous>, transform_indices = @transform_1, window_bounds = array<i64: 1, 32>}, {pipeline_mode = #tpu.pipeline_mode<synchronous>, transform_indices = @transform_2, window_bounds = array<i64: 1, 32>}, {pipeline_mode = #tpu.pipeline_mode<synchronous>, transform_indices = @transform_3, window_bounds = array<i64: 32, 96>}, {pipeline_mode = #tpu.pipeline_mode<synchronous>, transform_indices = @transform_4, window_bounds = array<i64: 1, 96>}, {pipeline_mode = #tpu.pipeline_mode<synchronous>, transform_indices = @transform_5, window_bounds = array<i64: 32, 32>}, {pipeline_mode = #tpu.pipeline_mode<synchronous>, transform_indices = @transform_6, window_bounds = array<i64: 1, 32>}, {pipeline_mode = #tpu.pipeline_mode<synchronous>, transform_indices = @transform_7, window_bounds = array<i64: 1, 32>}, {pipeline_mode = #tpu.pipeline_mode<synchronous>, transform_indices = @transform_8, window_bounds = array<i64: 1, 32>}, {pipeline_mode = #tpu.pipeline_mode<synchronous>, transform_indices = @transform_9, window_bounds = array<i64: 32, 64>}, {pipeline_mode = #tpu.pipeline_mode<synchronous>, transform_indices = @transform_10, window_bounds = array<i64: 1, 64>}, {pipeline_mode = #tpu.pipeline_mode<synchronous>, transform_indices = @transform_11, window_bounds = array<i64: 64, 32>}, {pipeline_mode = #tpu.pipeline_mode<synchronous>, transform_indices = @transform_12, window_bounds = array<i64: 1, 32>}, {pipeline_mode = #tpu.pipeline_mode<synchronous>, transform_indices = @transform_13, window_bounds = array<i64: 1, 32>}, {pipeline_mode = #tpu.pipeline_mode<synchronous>, transform_indices = @transform_14, window_bounds = array<i64: 1, 32>}, {transform_indices = @transform_15, window_bounds = array<i64: 1, 8, 32>}, {transform_indices = @transform_16, window_bounds = array<i64: 1, 4, 8, 8>}]} {
    %c0 = arith.constant 0 : index
    %c0_0 = arith.constant 0 : index
    %c0_1 = arith.constant 0 : index
    %0 = vector.load %arg1[%c0, %c0_0, %c0_1] : memref<1x8x32xf32, #tpu.memory_space<vmem>>, vector<1x8x32xf32>
    %1 = vector.shape_cast %0 : vector<1x8x32xf32> to vector<8x32xf32>
    %c0_2 = arith.constant 0 : index
    %c0_3 = arith.constant 0 : index
    %2 = vector.load %arg2[%c0_2, %c0_3] : memref<1x32xf32, #tpu.memory_space<vmem>>, vector<1x32xf32>
    %c0_4 = arith.constant 0 : index
    %c0_5 = arith.constant 0 : index
    %3 = vector.load %arg3[%c0_4, %c0_5] : memref<1x32xf32, #tpu.memory_space<vmem>>, vector<1x32xf32>
    %cst = arith.constant dense<0.000000e+00> : vector<8xf32>
    %4 = vector.multi_reduction <add>, %1, %cst [1] : vector<8x32xf32> to vector<8xf32>
    %5 = vector.shape_cast %4 : vector<8xf32> to vector<8x1xf32>
    %cst_6 = arith.constant 3.200000e+01 : f32
    %6 = vector.broadcast %cst_6 : f32 to vector<8x1xf32>
    %7 = arith.divf %5, %6 : vector<8x1xf32>
    %8 = vector.broadcast %7 : vector<8x1xf32> to vector<8x32xf32>
    %9 = arith.subf %1, %8 : vector<8x32xf32>
    %10 = arith.mulf %9, %9 : vector<8x32xf32>
    %cst_7 = arith.constant dense<0.000000e+00> : vector<8xf32>
    %11 = vector.multi_reduction <add>, %10, %cst_7 [1] : vector<8x32xf32> to vector<8xf32>
    %12 = vector.shape_cast %11 : vector<8xf32> to vector<8x1xf32>
    %cst_8 = arith.constant 3.200000e+01 : f32
    %13 = vector.broadcast %cst_8 : f32 to vector<8x1xf32>
    %14 = arith.divf %12, %13 : vector<8x1xf32>
    %cst_9 = arith.constant 9.99999997E-7 : f32
    %15 = vector.broadcast %cst_9 : f32 to vector<8x1xf32>
    %16 = arith.addf %14, %15 : vector<8x1xf32>
    %17 = math.rsqrt %16 : vector<8x1xf32>
    %18 = vector.broadcast %17 : vector<8x1xf32> to vector<8x32xf32>
    %19 = arith.mulf %9, %18 : vector<8x32xf32>
    %20 = vector.broadcast %2 : vector<1x32xf32> to vector<8x32xf32>
    %21 = arith.mulf %19, %20 : vector<8x32xf32>
    %22 = vector.broadcast %3 : vector<1x32xf32> to vector<8x32xf32>
    %23 = arith.addf %21, %22 : vector<8x32xf32>
    %c0_10 = arith.constant 0 : index
    %c0_11 = arith.constant 0 : index
    %24 = vector.load %arg4[%c0_10, %c0_11] : memref<32x96xf32, #tpu.memory_space<vmem>>, vector<32x96xf32>
    %cst_12 = arith.constant dense<0.000000e+00> : vector<8x96xf32>
    %25 = tpu.matmul %23, %24, %cst_12 {dimension_numbers = #tpu.dot_dimension_numbers<[1], [0], [0], [1], [0, 0, 1, 1], [], []>} : vector<8x32xf32>, vector<32x96xf32>, vector<8x96xf32> -> vector<8x96xf32>
    %c0_13 = arith.constant 0 : index
    %c0_14 = arith.constant 0 : index
    %26 = vector.load %arg5[%c0_13, %c0_14] : memref<1x96xf32, #tpu.memory_space<vmem>>, vector<1x96xf32>
    %27 = vector.broadcast %26 : vector<1x96xf32> to vector<8x96xf32>
    %28 = arith.addf %25, %27 : vector<8x96xf32>
    %cst_15 = arith.constant 0.000000e+00 : f32
    %29 = vector.broadcast %cst_15 : f32 to vector<8x32xf32>
    %30 = vector.extract_strided_slice %28 {offsets = [0, 0], sizes = [8, 8], strides = [1, 1]} : vector<8x96xf32> to vector<8x8xf32>
    %31 = vector.extract_strided_slice %28 {offsets = [0, 32], sizes = [8, 8], strides = [1, 1]} : vector<8x96xf32> to vector<8x8xf32>
    %32 = vector.extract_strided_slice %28 {offsets = [0, 64], sizes = [8, 8], strides = [1, 1]} : vector<8x96xf32> to vector<8x8xf32>
    %cst_16 = arith.constant dense<0.000000e+00> : vector<8x8xf32>
    %33 = tpu.matmul %30, %31, %cst_16 {dimension_numbers = #tpu.dot_dimension_numbers<[1], [1], [0], [0], [0, 0, 1, 0], [], []>} : vector<8x8xf32>, vector<8x8xf32>, vector<8x8xf32> -> vector<8x8xf32>
    %cst_17 = arith.constant 0.353553385 : f32
    %34 = vector.broadcast %cst_17 : f32 to vector<8x8xf32>
    %35 = arith.mulf %33, %34 : vector<8x8xf32>
    %cst_18 = arith.constant dense<0xFF800000> : vector<8xf32>
    %36 = vector.multi_reduction <maximumf>, %35, %cst_18 [1] : vector<8x8xf32> to vector<8xf32>
    %37 = vector.shape_cast %36 : vector<8xf32> to vector<8x1xf32>
    %38 = vector.broadcast %37 : vector<8x1xf32> to vector<8x8xf32>
    %39 = arith.subf %35, %38 : vector<8x8xf32>
    %40 = math.exp %39 : vector<8x8xf32>
    %cst_19 = arith.constant dense<0.000000e+00> : vector<8xf32>
    %41 = vector.multi_reduction <add>, %40, %cst_19 [1] : vector<8x8xf32> to vector<8xf32>
    %42 = vector.shape_cast %41 : vector<8xf32> to vector<8x1xf32>
    %43 = tpu.reciprocal %42 {approx = true} : vector<8x1xf32> -> vector<8x1xf32>
    %44 = vector.broadcast %43 : vector<8x1xf32> to vector<8x8xf32>
    %45 = arith.mulf %40, %44 : vector<8x8xf32>
    %c0_20 = arith.constant 0 : index
    %c0_21 = arith.constant 0 : index
    %c0_22 = arith.constant 0 : index
    %c0_23 = arith.constant 0 : index
    %46 = vector.load %arg17[%c0_20, %c0_21, %c0_22, %c0_23] : memref<1x4x8x8xf32, #tpu.memory_space<vmem>>, vector<1x1x8x8xf32>
    %47 = vector.shape_cast %46 : vector<1x1x8x8xf32> to vector<8x8xf32>
    %48 = vector.shape_cast %45 : vector<8x8xf32> to vector<1x1x8x8xf32>
    tpu.vector_store %arg17[%c0_20, %c0_21, %c0_22, %c0_23], %48 {strides = array<i32>} : memref<1x4x8x8xf32, #tpu.memory_space<vmem>>, vector<1x1x8x8xf32>,
    %cst_24 = arith.constant dense<0.000000e+00> : vector<8x8xf32>
    %49 = tpu.matmul %45, %32, %cst_24 {dimension_numbers = #tpu.dot_dimension_numbers<[1], [0], [0], [1], [0, 0, 1, 1], [], []>} : vector<8x8xf32>, vector<8x8xf32>, vector<8x8xf32> -> vector<8x8xf32>
    %c0_25 = arith.constant 0 : index
    %c0_26 = arith.constant 0 : index
    %50 = vector.load %arg6[%c0_25, %c0_26] : memref<32x32xf32, #tpu.memory_space<vmem>>, vector<8x32xf32>
    %cst_27 = arith.constant dense<0.000000e+00> : vector<8x32xf32>
    %51 = tpu.matmul %49, %50, %cst_27 {dimension_numbers = #tpu.dot_dimension_numbers<[1], [0], [0], [1], [0, 0, 1, 1], [], []>} : vector<8x8xf32>, vector<8x32xf32>, vector<8x32xf32> -> vector<8x32xf32>
    %52 = arith.addf %29, %51 : vector<8x32xf32>
    %53 = vector.extract_strided_slice %28 {offsets = [0, 8], sizes = [8, 8], strides = [1, 1]} : vector<8x96xf32> to vector<8x8xf32>
    %54 = vector.extract_strided_slice %28 {offsets = [0, 40], sizes = [8, 8], strides = [1, 1]} : vector<8x96xf32> to vector<8x8xf32>
    %55 = vector.extract_strided_slice %28 {offsets = [0, 72], sizes = [8, 8], strides = [1, 1]} : vector<8x96xf32> to vector<8x8xf32>
    %cst_28 = arith.constant dense<0.000000e+00> : vector<8x8xf32>
    %56 = tpu.matmul %53, %54, %cst_28 {dimension_numbers = #tpu.dot_dimension_numbers<[1], [1], [0], [0], [0, 0, 1, 0], [], []>} : vector<8x8xf32>, vector<8x8xf32>, vector<8x8xf32> -> vector<8x8xf32>
    %cst_29 = arith.constant 0.353553385 : f32
    %57 = vector.broadcast %cst_29 : f32 to vector<8x8xf32>
    %58 = arith.mulf %56, %57 : vector<8x8xf32>
    %cst_30 = arith.constant dense<0xFF800000> : vector<8xf32>
    %59 = vector.multi_reduction <maximumf>, %58, %cst_30 [1] : vector<8x8xf32> to vector<8xf32>
    %60 = vector.shape_cast %59 : vector<8xf32> to vector<8x1xf32>
    %61 = vector.broadcast %60 : vector<8x1xf32> to vector<8x8xf32>
    %62 = arith.subf %58, %61 : vector<8x8xf32>
    %63 = math.exp %62 : vector<8x8xf32>
    %cst_31 = arith.constant dense<0.000000e+00> : vector<8xf32>
    %64 = vector.multi_reduction <add>, %63, %cst_31 [1] : vector<8x8xf32> to vector<8xf32>
    %65 = vector.shape_cast %64 : vector<8xf32> to vector<8x1xf32>
    %66 = tpu.reciprocal %65 {approx = true} : vector<8x1xf32> -> vector<8x1xf32>
    %67 = vector.broadcast %66 : vector<8x1xf32> to vector<8x8xf32>
    %68 = arith.mulf %63, %67 : vector<8x8xf32>
    %c0_32 = arith.constant 0 : index
    %c1 = arith.constant 1 : index
    %c0_33 = arith.constant 0 : index
    %c0_34 = arith.constant 0 : index
    %69 = vector.load %arg17[%c0_32, %c1, %c0_33, %c0_34] : memref<1x4x8x8xf32, #tpu.memory_space<vmem>>, vector<1x1x8x8xf32>
    %70 = vector.shape_cast %69 : vector<1x1x8x8xf32> to vector<8x8xf32>
    %71 = vector.shape_cast %68 : vector<8x8xf32> to vector<1x1x8x8xf32>
    tpu.vector_store %arg17[%c0_32, %c1, %c0_33, %c0_34], %71 {strides = array<i32>} : memref<1x4x8x8xf32, #tpu.memory_space<vmem>>, vector<1x1x8x8xf32>,
    %cst_35 = arith.constant dense<0.000000e+00> : vector<8x8xf32>
    %72 = tpu.matmul %68, %55, %cst_35 {dimension_numbers = #tpu.dot_dimension_numbers<[1], [0], [0], [1], [0, 0, 1, 1], [], []>} : vector<8x8xf32>, vector<8x8xf32>, vector<8x8xf32> -> vector<8x8xf32>
    %c8 = arith.constant 8 : index
    %c0_36 = arith.constant 0 : index
    %73 = vector.load %arg6[%c8, %c0_36] : memref<32x32xf32, #tpu.memory_space<vmem>>, vector<8x32xf32>
    %cst_37 = arith.constant dense<0.000000e+00> : vector<8x32xf32>
    %74 = tpu.matmul %72, %73, %cst_37 {dimension_numbers = #tpu.dot_dimension_numbers<[1], [0], [0], [1], [0, 0, 1, 1], [], []>} : vector<8x8xf32>, vector<8x32xf32>, vector<8x32xf32> -> vector<8x32xf32>
    %75 = arith.addf %52, %74 : vector<8x32xf32>
    %76 = vector.extract_strided_slice %28 {offsets = [0, 16], sizes = [8, 8], strides = [1, 1]} : vector<8x96xf32> to vector<8x8xf32>
    %77 = vector.extract_strided_slice %28 {offsets = [0, 48], sizes = [8, 8], strides = [1, 1]} : vector<8x96xf32> to vector<8x8xf32>
    %78 = vector.extract_strided_slice %28 {offsets = [0, 80], sizes = [8, 8], strides = [1, 1]} : vector<8x96xf32> to vector<8x8xf32>
    %cst_38 = arith.constant dense<0.000000e+00> : vector<8x8xf32>
    %79 = tpu.matmul %76, %77, %cst_38 {dimension_numbers = #tpu.dot_dimension_numbers<[1], [1], [0], [0], [0, 0, 1, 0], [], []>} : vector<8x8xf32>, vector<8x8xf32>, vector<8x8xf32> -> vector<8x8xf32>
    %cst_39 = arith.constant 0.353553385 : f32
    %80 = vector.broadcast %cst_39 : f32 to vector<8x8xf32>
    %81 = arith.mulf %79, %80 : vector<8x8xf32>
    %cst_40 = arith.constant dense<0xFF800000> : vector<8xf32>
    %82 = vector.multi_reduction <maximumf>, %81, %cst_40 [1] : vector<8x8xf32> to vector<8xf32>
    %83 = vector.shape_cast %82 : vector<8xf32> to vector<8x1xf32>
    %84 = vector.broadcast %83 : vector<8x1xf32> to vector<8x8xf32>
    %85 = arith.subf %81, %84 : vector<8x8xf32>
    %86 = math.exp %85 : vector<8x8xf32>
    %cst_41 = arith.constant dense<0.000000e+00> : vector<8xf32>
    %87 = vector.multi_reduction <add>, %86, %cst_41 [1] : vector<8x8xf32> to vector<8xf32>
    %88 = vector.shape_cast %87 : vector<8xf32> to vector<8x1xf32>
    %89 = tpu.reciprocal %88 {approx = true} : vector<8x1xf32> -> vector<8x1xf32>
    %90 = vector.broadcast %89 : vector<8x1xf32> to vector<8x8xf32>
    %91 = arith.mulf %86, %90 : vector<8x8xf32>
    %c0_42 = arith.constant 0 : index
    %c2 = arith.constant 2 : index
    %c0_43 = arith.constant 0 : index
    %c0_44 = arith.constant 0 : index
    %92 = vector.load %arg17[%c0_42, %c2, %c0_43, %c0_44] : memref<1x4x8x8xf32, #tpu.memory_space<vmem>>, vector<1x1x8x8xf32>
    %93 = vector.shape_cast %92 : vector<1x1x8x8xf32> to vector<8x8xf32>
    %94 = vector.shape_cast %91 : vector<8x8xf32> to vector<1x1x8x8xf32>
    tpu.vector_store %arg17[%c0_42, %c2, %c0_43, %c0_44], %94 {strides = array<i32>} : memref<1x4x8x8xf32, #tpu.memory_space<vmem>>, vector<1x1x8x8xf32>,
    %cst_45 = arith.constant dense<0.000000e+00> : vector<8x8xf32>
    %95 = tpu.matmul %91, %78, %cst_45 {dimension_numbers = #tpu.dot_dimension_numbers<[1], [0], [0], [1], [0, 0, 1, 1], [], []>} : vector<8x8xf32>, vector<8x8xf32>, vector<8x8xf32> -> vector<8x8xf32>
    %c16 = arith.constant 16 : index
    %c0_46 = arith.constant 0 : index
    %96 = vector.load %arg6[%c16, %c0_46] : memref<32x32xf32, #tpu.memory_space<vmem>>, vector<8x32xf32>
    %cst_47 = arith.constant dense<0.000000e+00> : vector<8x32xf32>
    %97 = tpu.matmul %95, %96, %cst_47 {dimension_numbers = #tpu.dot_dimension_numbers<[1], [0], [0], [1], [0, 0, 1, 1], [], []>} : vector<8x8xf32>, vector<8x32xf32>, vector<8x32xf32> -> vector<8x32xf32>
    %98 = arith.addf %75, %97 : vector<8x32xf32>
    %99 = vector.extract_strided_slice %28 {offsets = [0, 24], sizes = [8, 8], strides = [1, 1]} : vector<8x96xf32> to vector<8x8xf32>
    %100 = vector.extract_strided_slice %28 {offsets = [0, 56], sizes = [8, 8], strides = [1, 1]} : vector<8x96xf32> to vector<8x8xf32>
    %101 = vector.extract_strided_slice %28 {offsets = [0, 88], sizes = [8, 8], strides = [1, 1]} : vector<8x96xf32> to vector<8x8xf32>
    %cst_48 = arith.constant dense<0.000000e+00> : vector<8x8xf32>
    %102 = tpu.matmul %99, %100, %cst_48 {dimension_numbers = #tpu.dot_dimension_numbers<[1], [1], [0], [0], [0, 0, 1, 0], [], []>} : vector<8x8xf32>, vector<8x8xf32>, vector<8x8xf32> -> vector<8x8xf32>
    %cst_49 = arith.constant 0.353553385 : f32
    %103 = vector.broadcast %cst_49 : f32 to vector<8x8xf32>
    %104 = arith.mulf %102, %103 : vector<8x8xf32>
    %cst_50 = arith.constant dense<0xFF800000> : vector<8xf32>
    %105 = vector.multi_reduction <maximumf>, %104, %cst_50 [1] : vector<8x8xf32> to vector<8xf32>
    %106 = vector.shape_cast %105 : vector<8xf32> to vector<8x1xf32>
    %107 = vector.broadcast %106 : vector<8x1xf32> to vector<8x8xf32>
    %108 = arith.subf %104, %107 : vector<8x8xf32>
    %109 = math.exp %108 : vector<8x8xf32>
    %cst_51 = arith.constant dense<0.000000e+00> : vector<8xf32>
    %110 = vector.multi_reduction <add>, %109, %cst_51 [1] : vector<8x8xf32> to vector<8xf32>
    %111 = vector.shape_cast %110 : vector<8xf32> to vector<8x1xf32>
    %112 = tpu.reciprocal %111 {approx = true} : vector<8x1xf32> -> vector<8x1xf32>
    %113 = vector.broadcast %112 : vector<8x1xf32> to vector<8x8xf32>
    %114 = arith.mulf %109, %113 : vector<8x8xf32>
    %c0_52 = arith.constant 0 : index
    %c3 = arith.constant 3 : index
    %c0_53 = arith.constant 0 : index
    %c0_54 = arith.constant 0 : index
    %115 = vector.load %arg17[%c0_52, %c3, %c0_53, %c0_54] : memref<1x4x8x8xf32, #tpu.memory_space<vmem>>, vector<1x1x8x8xf32>
    %116 = vector.shape_cast %115 : vector<1x1x8x8xf32> to vector<8x8xf32>
    %117 = vector.shape_cast %114 : vector<8x8xf32> to vector<1x1x8x8xf32>
    tpu.vector_store %arg17[%c0_52, %c3, %c0_53, %c0_54], %117 {strides = array<i32>} : memref<1x4x8x8xf32, #tpu.memory_space<vmem>>, vector<1x1x8x8xf32>,
    %cst_55 = arith.constant dense<0.000000e+00> : vector<8x8xf32>
    %118 = tpu.matmul %114, %101, %cst_55 {dimension_numbers = #tpu.dot_dimension_numbers<[1], [0], [0], [1], [0, 0, 1, 1], [], []>} : vector<8x8xf32>, vector<8x8xf32>, vector<8x8xf32> -> vector<8x8xf32>
    %c24 = arith.constant 24 : index
    %c0_56 = arith.constant 0 : index
    %119 = vector.load %arg6[%c24, %c0_56] : memref<32x32xf32, #tpu.memory_space<vmem>>, vector<8x32xf32>
    %cst_57 = arith.constant dense<0.000000e+00> : vector<8x32xf32>
    %120 = tpu.matmul %118, %119, %cst_57 {dimension_numbers = #tpu.dot_dimension_numbers<[1], [0], [0], [1], [0, 0, 1, 1], [], []>} : vector<8x8xf32>, vector<8x32xf32>, vector<8x32xf32> -> vector<8x32xf32>
    %121 = arith.addf %98, %120 : vector<8x32xf32>
    %122 = arith.addf %1, %121 : vector<8x32xf32>
    %c0_58 = arith.constant 0 : index
    %c0_59 = arith.constant 0 : index
    %123 = vector.load %arg7[%c0_58, %c0_59] : memref<1x32xf32, #tpu.memory_space<vmem>>, vector<1x32xf32>
    %124 = vector.broadcast %123 : vector<1x32xf32> to vector<8x32xf32>
    %125 = arith.addf %122, %124 : vector<8x32xf32>
    %c0_60 = arith.constant 0 : index
    %c0_61 = arith.constant 0 : index
    %126 = vector.load %arg8[%c0_60, %c0_61] : memref<1x32xf32, #tpu.memory_space<vmem>>, vector<1x32xf32>
    %c0_62 = arith.constant 0 : index
    %c0_63 = arith.constant 0 : index
    %127 = vector.load %arg9[%c0_62, %c0_63] : memref<1x32xf32, #tpu.memory_space<vmem>>, vector<1x32xf32>
    %cst_64 = arith.constant dense<0.000000e+00> : vector<8xf32>
    %128 = vector.multi_reduction <add>, %125, %cst_64 [1] : vector<8x32xf32> to vector<8xf32>
    %129 = vector.shape_cast %128 : vector<8xf32> to vector<8x1xf32>
    %cst_65 = arith.constant 3.200000e+01 : f32
    %130 = vector.broadcast %cst_65 : f32 to vector<8x1xf32>
    %131 = arith.divf %129, %130 : vector<8x1xf32>
    %132 = vector.broadcast %131 : vector<8x1xf32> to vector<8x32xf32>
    %133 = arith.subf %125, %132 : vector<8x32xf32>
    %134 = arith.mulf %133, %133 : vector<8x32xf32>
    %cst_66 = arith.constant dense<0.000000e+00> : vector<8xf32>
    %135 = vector.multi_reduction <add>, %134, %cst_66 [1] : vector<8x32xf32> to vector<8xf32>
    %136 = vector.shape_cast %135 : vector<8xf32> to vector<8x1xf32>
    %cst_67 = arith.constant 3.200000e+01 : f32
    %137 = vector.broadcast %cst_67 : f32 to vector<8x1xf32>
    %138 = arith.divf %136, %137 : vector<8x1xf32>
    %cst_68 = arith.constant 9.99999997E-7 : f32
    %139 = vector.broadcast %cst_68 : f32 to vector<8x1xf32>
    %140 = arith.addf %138, %139 : vector<8x1xf32>
    %141 = math.rsqrt %140 : vector<8x1xf32>
    %142 = vector.broadcast %141 : vector<8x1xf32> to vector<8x32xf32>
    %143 = arith.mulf %133, %142 : vector<8x32xf32>
    %144 = vector.broadcast %126 : vector<1x32xf32> to vector<8x32xf32>
    %145 = arith.mulf %143, %144 : vector<8x32xf32>
    %146 = vector.broadcast %127 : vector<1x32xf32> to vector<8x32xf32>
    %147 = arith.addf %145, %146 : vector<8x32xf32>
    %c0_69 = arith.constant 0 : index
    %c0_70 = arith.constant 0 : index
    %148 = vector.load %arg10[%c0_69, %c0_70] : memref<32x64xf32, #tpu.memory_space<vmem>>, vector<32x64xf32>
    %cst_71 = arith.constant dense<0.000000e+00> : vector<8x64xf32>
    %149 = tpu.matmul %147, %148, %cst_71 {dimension_numbers = #tpu.dot_dimension_numbers<[1], [0], [0], [1], [0, 0, 1, 1], [], []>} : vector<8x32xf32>, vector<32x64xf32>, vector<8x64xf32> -> vector<8x64xf32>
    %c0_72 = arith.constant 0 : index
    %c0_73 = arith.constant 0 : index
    %150 = vector.load %arg11[%c0_72, %c0_73] : memref<1x64xf32, #tpu.memory_space<vmem>>, vector<1x64xf32>
    %151 = vector.broadcast %150 : vector<1x64xf32> to vector<8x64xf32>
    %152 = arith.addf %149, %151 : vector<8x64xf32>
    %cst_74 = arith.constant 5.000000e-01 : f32
    %153 = vector.broadcast %cst_74 : f32 to vector<8x64xf32>
    %154 = arith.mulf %153, %152 : vector<8x64xf32>
    %155 = arith.mulf %152, %152 : vector<8x64xf32>
    %156 = arith.mulf %155, %152 : vector<8x64xf32>
    %cst_75 = arith.constant 4.471500e-02 : f32
    %157 = vector.broadcast %cst_75 : f32 to vector<8x64xf32>
    %158 = arith.mulf %157, %156 : vector<8x64xf32>
    %159 = arith.addf %152, %158 : vector<8x64xf32>
    %cst_76 = arith.constant 0.797884583 : f32
    %160 = vector.broadcast %cst_76 : f32 to vector<8x64xf32>
    %161 = arith.mulf %160, %159 : vector<8x64xf32>
    %162 = math.tanh %161 : vector<8x64xf32>
    %cst_77 = arith.constant 1.000000e+00 : f32
    %163 = vector.broadcast %cst_77 : f32 to vector<8x64xf32>
    %164 = arith.addf %163, %162 : vector<8x64xf32>
    %165 = arith.mulf %154, %164 : vector<8x64xf32>
    %c0_78 = arith.constant 0 : index
    %c0_79 = arith.constant 0 : index
    %166 = vector.load %arg12[%c0_78, %c0_79] : memref<64x32xf32, #tpu.memory_space<vmem>>, vector<64x32xf32>
    %cst_80 = arith.constant dense<0.000000e+00> : vector<8x32xf32>
    %167 = tpu.matmul %165, %166, %cst_80 {dimension_numbers = #tpu.dot_dimension_numbers<[1], [0], [0], [1], [0, 0, 1, 1], [], []>} : vector<8x64xf32>, vector<64x32xf32>, vector<8x32xf32> -> vector<8x32xf32>
    %c0_81 = arith.constant 0 : index
    %c0_82 = arith.constant 0 : index
    %168 = vector.load %arg13[%c0_81, %c0_82] : memref<1x32xf32, #tpu.memory_space<vmem>>, vector<1x32xf32>
    %169 = vector.broadcast %168 : vector<1x32xf32> to vector<8x32xf32>
    %170 = arith.addf %167, %169 : vector<8x32xf32>
    %171 = arith.addf %125, %170 : vector<8x32xf32>
    %c0_83 = arith.constant 0 : index
    %c0_84 = arith.constant 0 : index
    %c0_85 = arith.constant 0 : index
    %172 = vector.load %arg16[%c0_83, %c0_84, %c0_85] : memref<1x8x32xf32, #tpu.memory_space<vmem>>, vector<1x8x32xf32>
    %173 = vector.shape_cast %172 : vector<1x8x32xf32> to vector<8x32xf32>
    %174 = vector.shape_cast %171 : vector<8x32xf32> to vector<1x8x32xf32>
    tpu.vector_store %arg16[%c0_83, %c0_84, %c0_85], %174 {strides = array<i32>} : memref<1x8x32xf32, #tpu.memory_space<vmem>>, vector<1x8x32xf32>,
    return
  }
  func.func @transform_0(%arg0: i32) -> (i32, i32, i32) {
    %c0_i32 = arith.constant 0 : i32
    %c0_i32_0 = arith.constant 0 : i32
    %c0_i32_1 = arith.constant 0 : i32
    return %arg0, %c0_i32, %c0_i32_0 : i32, i32, i32
  }
  func.func @transform_1(%arg0: i32) -> (i32, i32) {
    %c0_i32 = arith.constant 0 : i32
    %c0_i32_0 = arith.constant 0 : i32
    %c0_i32_1 = arith.constant 0 : i32
    return %c0_i32, %c0_i32_0 : i32, i32
  }
  func.func @transform_2(%arg0: i32) -> (i32, i32) {
    %c0_i32 = arith.constant 0 : i32
    %c0_i32_0 = arith.constant 0 : i32
    %c0_i32_1 = arith.constant 0 : i32
    return %c0_i32, %c0_i32_0 : i32, i32
  }
  func.func @transform_3(%arg0: i32) -> (i32, i32) {
    %c0_i32 = arith.constant 0 : i32
    %c0_i32_0 = arith.constant 0 : i32
    %c0_i32_1 = arith.constant 0 : i32
    return %c0_i32, %c0_i32_0 : i32, i32
  }
  func.func @transform_4(%arg0: i32) -> (i32, i32) {
    %c0_i32 = arith.constant 0 : i32
    %c0_i32_0 = arith.constant 0 : i32
    %c0_i32_1 = arith.constant 0 : i32
    return %c0_i32, %c0_i32_0 : i32, i32
  }
  func.func @transform_5(%arg0: i32) -> (i32, i32) {
    %c0_i32 = arith.constant 0 : i32
    %c0_i32_0 = arith.constant 0 : i32
    %c0_i32_1 = arith.constant 0 : i32
    return %c0_i32, %c0_i32_0 : i32, i32
  }
  func.func @transform_6(%arg0: i32) -> (i32, i32) {
    %c0_i32 = arith.constant 0 : i32
    %c0_i32_0 = arith.constant 0 : i32
    %c0_i32_1 = arith.constant 0 : i32
    return %c0_i32, %c0_i32_0 : i32, i32
  }
  func.func @transform_7(%arg0: i32) -> (i32, i32) {
    %c0_i32 = arith.constant 0 : i32
    %c0_i32_0 = arith.constant 0 : i32
    %c0_i32_1 = arith.constant 0 : i32
    return %c0_i32, %c0_i32_0 : i32, i32
  }
  func.func @transform_8(%arg0: i32) -> (i32, i32) {
    %c0_i32 = arith.constant 0 : i32
    %c0_i32_0 = arith.constant 0 : i32
    %c0_i32_1 = arith.constant 0 : i32
    return %c0_i32, %c0_i32_0 : i32, i32
  }
  func.func @transform_9(%arg0: i32) -> (i32, i32) {
    %c0_i32 = arith.constant 0 : i32
    %c0_i32_0 = arith.constant 0 : i32
    %c0_i32_1 = arith.constant 0 : i32
    return %c0_i32, %c0_i32_0 : i32, i32
  }
  func.func @transform_10(%arg0: i32) -> (i32, i32) {
    %c0_i32 = arith.constant 0 : i32
    %c0_i32_0 = arith.constant 0 : i32
    %c0_i32_1 = arith.constant 0 : i32
    return %c0_i32, %c0_i32_0 : i32, i32
  }
  func.func @transform_11(%arg0: i32) -> (i32, i32) {
    %c0_i32 = arith.constant 0 : i32
    %c0_i32_0 = arith.constant 0 : i32
    %c0_i32_1 = arith.constant 0 : i32
    return %c0_i32, %c0_i32_0 : i32, i32
  }
  func.func @transform_12(%arg0: i32) -> (i32, i32) {
    %c0_i32 = arith.constant 0 : i32
    %c0_i32_0 = arith.constant 0 : i32
    %c0_i32_1 = arith.constant 0 : i32
    return %c0_i32, %c0_i32_0 : i32, i32
  }
  func.func @transform_13(%arg0: i32) -> (i32, i32) {
    %c0_i32 = arith.constant 0 : i32
    %c0_i32_0 = arith.constant 0 : i32
    %c0_i32_1 = arith.constant 0 : i32
    return %c0_i32, %c0_i32_0 : i32, i32
  }
  func.func @transform_14(%arg0: i32) -> (i32, i32) {
    %c0_i32 = arith.constant 0 : i32
    %c0_i32_0 = arith.constant 0 : i32
    %c0_i32_1 = arith.constant 0 : i32
    return %c0_i32, %c0_i32_0 : i32, i32
  }
  func.func @transform_15(%arg0: i32) -> (i32, i32, i32) {
    %c0_i32 = arith.constant 0 : i32
    %c0_i32_0 = arith.constant 0 : i32
    %c0_i32_1 = arith.constant 0 : i32
    return %arg0, %c0_i32, %c0_i32_0 : i32, i32, i32
  }
  func.func @transform_16(%arg0: i32) -> (i32, i32, i32, i32) {
    %c0_i32 = arith.constant 0 : i32
    %c0_i32_0 = arith.constant 0 : i32
    %c0_i32_1 = arith.constant 0 : i32
    %c0_i32_2 = arith.constant 0 : i32
    return %arg0, %c0_i32, %c0_i32_0, %c0_i32_1 : i32, i32, i32, i32
  }
}

</mosaic_0001>

<bundles_post_ra>
// kernel: tpu_custom_call.1
= control target key start
LH: loop header
LB: loop body
LE: loop exit
PB: predicated region body
PF: predicated region fallthrough
CT: control target
= control target key end

     0   :  { %s2883_s0 = inlined_call_operand.hbm [shape: f32[2,8,32], index: 0, kind: input, shape index: {}]   ;;  %s2884_s1 = inlined_call_operand.vmem [shape: f32[1,32], index: 1, kind: input, shape index: {}]   ;;  %s2885_s2 = inlined_call_operand.vmem [shape: f32[1,32], index: 2, kind: input, shape index: {}]   ;;  %s2886_s3 = inlined_call_operand.vmem [shape: f32[32,96], index: 3, kind: input, shape index: {}]   ;;  %s2887_s4 = inlined_call_operand.vmem [shape: f32[1,96], index: 4, kind: input, shape index: {}]   ;;  %s2888_s5 = inlined_call_operand.vmem [shape: f32[32,32], index: 5, kind: input, shape index: {}]   ;;  %s2889_s6 = inlined_call_operand.vmem [shape: f32[1,32], index: 6, kind: input, shape index: {}]   ;;  %s2890_s7 = inlined_call_operand.vmem [shape: f32[1,32], index: 7, kind: input, shape index: {}]   ;;  %s2891_s8 = inlined_call_operand.vmem [shape: f32[1,32], index: 8, kind: input, shape index: {}]   ;;  %s2892_s9 = inlined_call_operand.vmem [shape: f32[32,64], index: 9, kind: input, shape index: {}]   ;;  %s2893_s10 = inlined_call_operand.vmem [shape: f32[1,64], index: 10, kind: input, shape index: {}]   ;;  %s2894_s11 = inlined_call_operand.vmem [shape: f32[64,32], index: 11, kind: input, shape index: {}]   ;;  %s2895_s12 = inlined_call_operand.vmem [shape: f32[1,32], index: 12, kind: input, shape index: {}]   ;;  %s2896_s13 = inlined_call_operand.vmem [shape: f32[1,32], index: 13, kind: input, shape index: {}]   ;;  %s2897_s14 = inlined_call_operand.vmem [shape: f32[1,32], index: 14, kind: input, shape index: {}]   ;;  %s2898_s15 = inlined_call_operand.hbm [shape: f32[2,8,32], index: 15, kind: output, shape index: {0}]   ;;  %s2899_s16 = inlined_call_operand.hbm [shape: f32[2,4,8,8], index: 16, kind: output, shape index: {1}]  }
   0x1   :  { %2909 = sst [smem:[#allocation16_spill]] %s2883_s0 }
   0x2   :  { %2910 = sst [smem:[#allocation17_spill]] %s2884_s1 }
   0x3   :  { %2911 = sst [smem:[#allocation18_spill]] %s2885_s2 }
   0x4   :  { %2912 = sst [smem:[#allocation19_spill]] %s2886_s3 }
   0x5   :  { %2913 = sst [smem:[#allocation20_spill]] %s2895_s12 }
   0x6   :  { %2914 = sst [smem:[#allocation21_spill]] %s2898_s15 }
   0x7   :  { %22 = vsyncpa [#allocation3], 0 }
   0x8   :  { %24 = vsyncpa [#allocation3 + $0x1], 0 }
   0x9   :  { %25 = vsyncpa [#allocation4], 0 }
   0xa   :  { %27 = vsyncpa [#allocation4 + $0x1], 0 }
   0xb   :  { %28 = vsyncpa [#allocation7], 0 }
   0xc   :  { %30 = vsyncpa [#allocation7 + $0x1], 0  ;;  %s2498_s21 = smov 0   ;;  %s2500_s22 = smov 0  }
   0xd   :  { %s2502_s13 = smov 0   ;;  %s2504_s23 = smov 0  }
   0xe LB: > { %2915 = sst [smem:[#allocation11_spill]] %s2381_s21  ;;  %s2519_s14 = sadd.s32 4294967295, %s2393_s23   ;;  %s2393_s23 = sphi %s2504_s23, %s2939_s23   ;;  %s2389_s13 = sphi %s2502_s13, %s2941_s13   ;;  %s2385_s22 = sphi %s2500_s22, %s2943_s22   ;;  %s2381_s21 = sphi %s2498_s21, %s2942_s21  }
   0xf   : > { %2916 = sst [smem:[#allocation12_spill]] %s2389_s13  ;;  %s1992_s24 = sadd.s32 4294967294, %s2393_s23  }
  0x10   : > { %s2523_s25 = sadd.s32 1, %s2393_s23   ;;  %s43_s26 = sadd.s32 1, %s2389_s13 }
  0x11   : > { %2917 = sst [smem:[#allocation13_spill]] %s2523_s25  ;;  %s40_s27 = ssub.s32 %s2393_s23, %s2523_s25 }
  0x12   : > { %p50_p0 = scmp.ne.s32.totalorder %s2389_s13, %s2385_s22  ;;  %p41_p1 = scmp.eq.s32.totalorder %s40_s27, 0 }
  0x13   : > { %p51_p2 = scmp.eq.s32.totalorder %s2393_s23, 0  ;;  %p56_p3 = scmp.ne.s32.totalorder %s2385_s22, %s2381_s21 }
  0x14   : > { %p57_p4 = scmp.eq.s32.totalorder %s2519_s14, 0  ;;  %p374_p7 = scmp.eq.s32.totalorder %s2519_s14, 1 }
  0x15   : > { %s2535_s28 = scalar_select %p41_p1, %s2389_s13, %s43_s26  }
  0x16   : > { %p2537_p5 = por %p51_p2, %p50_p0  ;;  %p2541_p6 = por %p57_p4, %p56_p3 }
  0x17   : > { %2918 = sst [smem:[#allocation14_spill]] %s2535_s28  ;;  %p380_p8 = scmp.eq.s32.totalorder %s1992_s24, 1 }
  0x18   : > { %s2920_s30 = scalar_select %p2541_p6, 1, 0 }
  0x19   : > { %p2200_p10 = scmp.lt.s32.totalorder %s2393_s23, 2  ;;  %p2548_p11 = por %p374_p7, %p50_p0 }
  0x1a   : > { %p2552_p12 = por %p380_p8, %p56_p3  ;;  %s468_s18 = sand.u32 1, %s2389_s13  }
  0x1b   : > { %s2921_s0 = scalar_select %p2548_p11, 1, 0 }
  0x1c   : > { %s2922_s17 = scalar_select %p2552_p12, 1, 0 }
  0x1d   : > { %s1996_s19 = sshll.u32 %s2393_s23, 7  ;;  %s1995_s20 = sshll.u32 %s468_s18, 3 }
  0x1e   : > { %2923 = sst [smem:[#allocation15_spill]] %s2922_s17  ;;  %s472_s24 = scalar_lea.vmem [#allocation2], %s1995_s20 }
  0x1f   : > { %s2924_s28 = sld [smem:[#allocation16_spill]]  ;;  %s479_s21 = sshll.u32 %s472_s24, 4  ;;  %s2569_s21 = int_to_ptr.vmem [resolvable:$true] %s479_s21 }
  0x20   : > { %p2565_p13 = pnand %p2200_p10, %p2537_p5  ;;  %s469_s13 = scalar_lea.sflag [#allocation3], %s468_s18 }
  0x22   : > { %p2273_p3 = pneg %p2565_p13 }
  0x25   : > { %s2561_s25 = scalar_lea.hbm %s2924_s28, %s1996_s19  ;;  %s2276_s29 = scalar_lea.hbm %s2924_s28, 256 }
  0x26   : > { %s2271_s17 = scalar_lea.hbm %s2561_s25, 128  ;;  %p2277_p5 = scmp.lt.s32.totalorder %s2561_s25, %s2924_s28 }
  0x27   : > { %p2272_p2 = scmp.ne.s32.totalorder %s2561_s25, %s2271_s17  ;;  %p2278_p8 = scmp.lt.s32.totalorder %s2276_s29, %s2271_s17 }
  0x29   : > { %p2274_p4 = pnand %p2273_p3, %p2272_p2  ;;  %p2279_p10 = por %p2278_p8, %p2277_p5 }
  0x2b   : > { %p2275_p7 = pneg %p2274_p4 }
  0x2d   : > { %p2280_p9 = pnand %p2279_p10, %p2275_p7 }
  0x2f   : > { %2283 = shalt.err (!%p2280_p9)
}
  0x30   : > { %s2284_s18 = scalar_lea.vmem %s2569_s21, 128  ;;  %s2395_s24 = smov [#allocation2]  }
  0x31   : > { %p2285_p0 = scmp.ne.s32.totalorder %s2569_s21, %s2284_s18  ;;  %s2289_s12 = sshll.u32 %s2395_s24, 4  ;;  %s2290_s12 = int_to_ptr.vmem [resolvable:$false] %s2289_s12 }
  0x32   : > { %s2291_s19 = scalar_lea.vmem %s2290_s12, 256  ;;  %p2292_p4 = scmp.lt.s32.totalorder %s2569_s21, %s2290_s12 }
  0x33   : > { %p2287_p1 = pnand %p2285_p0, %p2273_p3  ;;  %p2293_p12 = scmp.lt.s32.totalorder %s2291_s19, %s2284_s18 }
  0x35   : > { %p2288_p2 = pneg %p2287_p1  ;;  %p2294_p11 = por %p2293_p12, %p2292_p4 }
  0x37   : > { %p2295_p6 = pnand %p2294_p11, %p2288_p2 }
  0x39   : > { %2298 = shalt.err (!%p2295_p6)
}
  0x3a   : > { %2192 = dma.hbm_to_vmem [thread:$0]  (!%p2565_p13), %s2561_s25, 128, %s2569_s21, %s469_s13  }
  0x3b   : > { %p2926_p9 = scmp.lt.s32.totalorder %s2393_s23, 3  ;;  %p2927_p7 = scmp.ge.s32.totalorder %s2393_s23, 1 }
  0x3d   : > { %p485_p0 = pnand %p2927_p7, %p2926_p9 }
  0x3e   : > { %s2596_s17 = sand.u32 (!%p485_p0), 1, %s2385_s22   ;;  %p2928_p6 = scmp.ne.s32.totalorder (!%p485_p0), %s2920_s30, 0 }
  0x3f   : > { %488 = sbr.rel (%p485_p0) target bundleno = 3550 (0xdde), region = 80  ;;  %s1998_s12 = sshll.u32 (!%p485_p0), %s2596_s17, 3 }
  0x40   : > { %s491_s20 = scalar_lea.sflag (!%p485_p0), [#allocation3], %s2596_s17  ;;  %s494_s15 = scalar_lea.vmem (!%p485_p0), [#allocation2], %s1998_s12 }
  0x44   : > { %2368 = dma.done.wait (%p2928_p6), %s491_s20, 128  }
  0x45   : > { %2370 = vsyncadd (%p2928_p6), %s491_s20, 4294967168  ;;  %vm551_vm0 = vcmask 261120   ;;  %v2606_v0 = vld [vmem:[%s494_s15] sm:$0xff]  ;;  %s2929_s3 = sld [smem:[#allocation19_spill]]  ;;  %v2396_v8 = vmov 0.0   ;;  %vm2397_vm1 = vmmov 0  }
  0x46   : > { %v552_v1 = vsel %vm551_vm0, %v2606_v0, 0.0  ;;  %2082 = vmatprep.subr.mxu0 %v2396_v8  ;;  %2090 = vmatprep.mubr.msk.f32.mxu0 %vm2397_vm1, %v2396_v8  ;;  %s2930_s1 = sld [smem:[#allocation17_spill]]  ;;  %v2003_v21 = vld [vmem:[%s2887_s4] ss:$0 sm:$0xff]  ;;  %s2398_s25 = smov 120   ;;  %vm667_vm2 = vcmask 64512  }
  0x47   : > { %553 = vadd.xlane.f32.xlu0 %v552_v1  ;;  %2098 = vmatprep.subr.mxu1 %v2396_v8  ;;  %s2931_s2 = sld [smem:[#allocation18_spill]]  ;;  %s2399_s30 = smov 96   ;;  %v831_v54 = vld [vmem:[%s2888_s5] sm:$0xff]  ;;  %v1000_v55 = vld [vmem:[%s2888_s5 + $0x8] sm:$0xff]  ;;  %vm1779_vm3 = vcmask 523264  }
  0x48   : > { %2100 = vmatprep.mubr.msk.f32.mxu1 %vm2397_vm1, %v2396_v8  ;;  %s2400_s29 = smov 88   ;;  %s2401_s26 = smov 56  }
  0x49   : > { %s2402_s27 = smov 64   ;;  %s2403_s18 = smov 80  }
  0x4a   : > { %s2404_s24 = smov 112   ;;  %s2000_s19 = sshll.u32 %s2596_s17, 5 }
  0x4b   : > { %v583_v7 = vld [vmem:[%s2929_s3 + $0x18] sm:$0xff]  ;;  %v582_v9 = vld [vmem:[%s2929_s3 + $0x10] sm:$0xff]  ;;  %v581_v10 = vld [vmem:[%s2929_s3 + $0x8] sm:$0xff]  ;;  %s2672_s20 = scalar_lea.vmem [#allocation6], %s2000_s19  ;;  %s2038_s15 = sshll.u32 %s2519_s14, 9 }
  0x4c   : > { %2083 = vmatpush3.msra.mxu0 %v583_v7  ;;  %v580_v11 = vld [vmem:[%s2929_s3] sm:$0xff]  ;;  %s1887_s21 = sshll.u32 %s2672_s20, 4  ;;  %p2932_p12 = scmp.ne.s32.totalorder %s2921_s0, 0  ;;  %s2816_s21 = int_to_ptr.vmem [resolvable:$true] %s1887_s21 }
  0x4d   : > { %2084 = vmatprep.subr.mxu0 %v2396_v8  ;;  %v2001_v16 = vld [vmem:[%s2930_s1] ss:$0 sm:$0xff] }
  0x4e   : > { %2085 = vmatpush3.msra.mxu0 %v582_v9  ;;  %v2002_v18 = vld [vmem:[%s2931_s2] ss:$0 sm:$0xff] }
  0x4f   : > { %2086 = vmatprep.subr.mxu0 %v2396_v8 }
  0x50   : > { %2087 = vmatpush3.msra.mxu0 %v581_v10 }
  0x51   : > { %2088 = vmatprep.subr.mxu0 %v2396_v8 }
  0x52   : > { %2089 = vmatpush3.msra.mxu0 %v580_v11 }
  0x53   : > { %2093 = vmatprep.subr.mxu0 %v2396_v8 }
  0xd0   : > { %v554_v2 = vpop.xlane.xlu0 %553 }
  0xd1   : > { %v556_v3 = vmul.f32 0.03125, %v554_v2 }
  0xd3   : > { %v557_v4 = vsub.f32 %v2606_v0, %v556_v3 }
  0xd5   : > { %v558_v5 = vmul.f32 %v557_v4, %v557_v4 }
  0xd7   : > { %v559_v6 = vsel %vm551_vm0, %v558_v5, 0.0 }
  0xd8   : > { %560 = vadd.xlane.f32.xlu0 %v559_v6 }
 0x161   : > { %v561_v12 = vpop.xlane.xlu0 %560 }
 0x162   : > { %v562_v13 = vmul.f32 0.03125, %v561_v12 }
 0x164   : > { %v563_v14 = vadd.f32 1e-06, %v562_v13 }
 0x166   : > { %2249 = vrsqrt.f32 %v563_v14 }
 0x173   : > { %v2250_v15 = vpop.eup %2249 }
 0x174   : > { %v565_v17 = vmul.f32 %v2250_v15, %v557_v4 }
 0x176   : > { %v572_v19 = vmul.f32 %v2001_v16, %v565_v17 }
 0x178   : > { %v579_v20 = vadd.f32 %v2002_v18, %v572_v19 }
 0x17a   : > { %2091 = vmatmul.mubr.msk.f32.vlgmr.msra.gmra.mxu0 %vm551_vm0, %v579_v20  ;;  %v1315_v20 = vld [vmem:[%s2888_s5 + $0x10] sm:$0xff] }
 0x17b   : > { %2095 = vmatprep.mubr.msk.f32.mxu0 %vm2397_vm1, %v2396_v8 }
 0x23a   : > { %v660_v22 = vpop.f32.mrf.mxu0 }
 0x23b   : > { %v2646_v23 = vadd.f32 %v2003_v21, %v660_v22 }
 0x23c   : > { %v2092_v24 = vpop.f32.mrf.mxu0 }
 0x23d   : > { %832 = vrot.lane.b32.xlu0 %v2646_v23, %s2398_s25  ;;  %665 = vrot.lane.b32.xlu1 %v2646_v23, %s2399_s30  ;;  %s2405_s30 = smov 48  }
 0x241   : > { %834 = vrot.lane.b32.xlu1 %v2646_v23, %s2400_s29  ;;  %s2406_s29 = smov 104  }
 0x2af   : > { %v666_v25 = vpop.permute.xlu1 %665  ;;  %v833_v27 = vpop.permute.xlu0 %832 }
 0x2b0   : > { %2094 = vmatpush3.xpose.msk.msra.mxu0 %vm667_vm2, %v666_v25 }
 0x2b1   : > { %2103 = vmatprep.subr.mxu0 %v2396_v8 }
 0x2b3   : > { %2096 = vmatmul.mubr.msk.f32.vlgmr.msra.gmra.mxu0 %vm667_vm2, %v2646_v23  ;;  %v835_v26 = vpop.permute.xlu1 %834 }
 0x2b4   : > { %2104 = vmatpush3.xpose.msk.msra.mxu0 %vm667_vm2, %v835_v26  ;;  %2105 = vmatprep.mubr.msk.f32.mxu0 %vm2397_vm1, %v2396_v8 }
 0x2b5   : > { %2113 = vmatprep.subr.mxu0 %v2396_v8 }
 0x2b7   : > { %2106 = vmatmul.mubr.msk.f32.vlgmr.msra.gmra.mxu0 %vm667_vm2, %v833_v27 }
 0x2b8   : > { %2115 = vmatprep.mubr.msk.f32.mxu0 %vm2397_vm1, %v2396_v8  ;;  %2114 = vmatpush3.msra.mxu0 %v1000_v55  ;;  %v1672_v55 = vld [vmem:[%s2892_s9 + $0x8] sm:$0xff] }
 0x2b9   : > { %2123 = vmatprep.subr.mxu0 %v2396_v8 }
 0x373   : > { %v738_v28 = vpop.f32.mrf.mxu0 }
 0x374   : > { %v742_v29 = vmul.f32 0.35355338, %v738_v28 }
 0x375   : > { %v2097_v30 = vpop.f32.mrf.mxu0 }
 0x376   : > { %v743_v31 = vsel %vm667_vm2, %v742_v29, -inf }
 0x377   : > { %744 = vmax.xlane.f32.xlu1 %v743_v31  ;;  %v906_v32 = vpop.f32.mrf.mxu0 }
 0x378   : > { %v910_v33 = vmul.f32 0.35355338, %v906_v32 }
 0x379   : > { %v2107_v34 = vpop.f32.mrf.mxu0 }
 0x37a   : > { %v911_v35 = vsel %vm667_vm2, %v910_v33, -inf }
 0x37b   : > { %912 = vmax.xlane.f32.xlu0 %v911_v35 }
 0x391   : > { %924 = vrot.lane.b32.xlu0 %v2646_v23, %s2401_s26  ;;  %s2407_s26 = smov 72  }
 0x400   : > { %v745_v36 = vpop.xlane.xlu1 %744 }
 0x401   : > { %v746_v37 = vsub.f32 %v742_v29, %v745_v36 }
 0x403   : > { %v747_v38 = vmul.f32 1.442695, %v746_v37 }
 0x404   : > { %v913_v39 = vpop.xlane.xlu0 %912 }
 0x405   : > { %2251 = vpow2.f32 %v747_v38  ;;  %v914_v40 = vsub.f32 %v910_v33, %v913_v39  ;;  %v1558_v33 = vld [vmem:[%s2888_s5 + $0x18] sm:$0xff] }
 0x407   : > { %v915_v41 = vmul.f32 1.442695, %v914_v40 }
 0x408   : > { %v925_v51 = vpop.permute.xlu0 %924 }
 0x409   : > { %2253 = vpow2.f32 %v915_v41 }
 0x412   : > { %v2252_v42 = vpop.eup %2251 }
 0x413   : > { %v749_v43 = vsel %vm667_vm2, %v2252_v42, 0.0 }
 0x414   : > { %750 = vadd.xlane.f32.xlu1 %v749_v43 }
 0x416   : > { %v2254_v44 = vpop.eup %2253 }
 0x417   : > { %v917_v45 = vsel %vm667_vm2, %v2254_v44, 0.0 }
 0x418   : > { %918 = vadd.xlane.f32.xlu1 %v917_v45 }
 0x429   : > { %755 = vrot.lane.b32.xlu1 %v2646_v23, %s2402_s27  ;;  %s2409_s27 = smov [#allocation6]  }
 0x42d   : > { %1149 = vrot.lane.b32.xlu1 %v2646_v23, %s2403_s18  ;;  %s2303_s18 = sshll.u32 %s2409_s27, 4  ;;  %s2304_s18 = int_to_ptr.vmem [resolvable:$false] %s2303_s18 }
 0x42e   : > { %p2306_p3 = scmp.lt.s32.totalorder %s2816_s21, %s2304_s18 }
 0x431   : > { %1147 = vrot.lane.b32.xlu1 %v2646_v23, %s2404_s24  ;;  %s2408_s24 = smov 40  }
 0x49d   : > { %v751_v46 = vpop.xlane.xlu1 %750 }
 0x49e   : > { %2255 = vrcp.f32 %v751_v46 }
 0x4a1   : > { %v919_v47 = vpop.xlane.xlu1 %918 }
 0x4a2   : > { %2257 = vrcp.f32 %v919_v47 }
 0x4a5   : > { %v756_v48 = vpop.permute.xlu1 %755 }
 0x4a6   : > { %2099 = vmatpush3.msra.mxu1 %v756_v48 }
 0x4a7   : > { %2108 = vmatprep.subr.mxu1 %v2396_v8 }
 0x4a9   : > { %v1150_v57 = vpop.permute.xlu1 %1149 }
 0x4ab   : > { %v2256_v49 = vpop.eup %2255 }
 0x4ac   : > { %v753_v50 = vmul.f32 %v2256_v49, %v2252_v42 }
 0x4ad   : > { %v1148_v61 = vpop.permute.xlu1 %1147 }
 0x4ae   : > { %754 = vst.msk [vmem:[%s2672_s20] sm:$0xff] %vm667_vm2, %v753_v50  ;;  %2101 = vmatmul.mubr.msk.f32.vlgmr.msra.gmra.mxu1 %vm667_vm2, %v753_v50 }
 0x4af   : > { %v2258_v52 = vpop.eup %2257  ;;  %2109 = vmatpush3.msra.mxu1 %v925_v51  ;;  %2110 = vmatprep.mubr.msk.f32.mxu1 %vm2397_vm1, %v2396_v8 }
 0x4b0   : > { %v921_v53 = vmul.f32 %v2258_v52, %v2254_v44  ;;  %2118 = vmatprep.subr.mxu1 %v2396_v8  ;;  %v2024_v44 = vld [vmem:[%s2889_s6] ss:$0 sm:$0xff] }
 0x4b2   : > { %2010 = vst.msk [vmem:[%s2672_s20 + $0x8] sm:$0xff] %vm667_vm2, %v921_v53  ;;  %2111 = vmatmul.mubr.msk.f32.vlgmr.msra.gmra.mxu1 %vm667_vm2, %v921_v53 }
 0x4b3   : > { %2120 = vmatprep.mubr.msk.f32.mxu1 %vm2397_vm1, %v2396_v8  ;;  %2119 = vmatpush3.msra.mxu1 %v831_v54  ;;  %v1674_v54 = vld [vmem:[%s2892_s9 + $0x18] sm:$0xff] }
 0x4b4   : > { %2128 = vmatprep.subr.mxu1 %v2396_v8 }
 0x56e   : > { %v827_v56 = vpop.f32.mrf.mxu1 }
 0x56f   : > { %2121 = vmatmul.mubr.msk.f32.vlgmr.msra.gmra.mxu1 %vm667_vm2, %v827_v56  ;;  %v1671_v56 = vld [vmem:[%s2892_s9] sm:$0xff] }
 0x570   : > { %v2102_v58 = vpop.f32.mrf.mxu1  ;;  %2130 = vmatprep.mubr.msk.f32.mxu1 %vm2397_vm1, %v2396_v8 }
 0x572   : > { %v996_v59 = vpop.f32.mrf.mxu1 }
 0x573   : > { %2116 = vmatmul.mubr.msk.f32.vlgmr.msra.gmra.mxu0 %vm667_vm2, %v996_v59 }
 0x574   : > { %2124 = vmatpush3.xpose.msk.msra.mxu0 %vm667_vm2, %v1150_v57  ;;  %v2112_v60 = vpop.f32.mrf.mxu1  ;;  %2125 = vmatprep.mubr.msk.f32.mxu0 %vm2397_vm1, %v2396_v8 }
 0x575   : > { %2133 = vmatprep.subr.mxu0 %v2396_v8 }
 0x577   : > { %2126 = vmatmul.mubr.msk.f32.vlgmr.msra.gmra.mxu0 %vm667_vm2, %v1148_v61  ;;  %v2025_v61 = vld [vmem:[%s2890_s7] ss:$0 sm:$0xff] }
 0x578   : > { %2135 = vmatprep.mubr.msk.f32.mxu0 %vm2397_vm1, %v2396_v8  ;;  %2134 = vmatpush3.msra.mxu0 %v1315_v20 }
 0x579   : > { %2143 = vmatprep.subr.mxu0 %v2396_v8 }
 0x62f   : > { %v1143_v62 = vpop.f32.mrf.mxu1 }
 0x631   : > { %v2122_v63 = vpop.f32.mrf.mxu1 }
 0x632   : > { %v2026_v63 = vld [vmem:[%s2891_s8] ss:$0 sm:$0xff] }
 0x633   : > { %v1070_v1 = vpop.f32.mrf.mxu0 }
 0x634   : > { %v1144_v2 = vadd.f32 %v1143_v62, %v1070_v1 }
 0x635   : > { %v2117_v3 = vpop.f32.mrf.mxu0 }
 0x636   : > { %v1771_v3 = vld [vmem:[%s2894_s11 + $0x38] sm:$0xff] }
 0x637   : > { %v1221_v4 = vpop.f32.mrf.mxu0 }
 0x638   : > { %v1225_v5 = vmul.f32 0.35355338, %v1221_v4  ;;  %v1770_v4 = vld [vmem:[%s2894_s11 + $0x30] sm:$0xff] }
 0x639   : > { %v2127_v6 = vpop.f32.mrf.mxu0 }
 0x63a   : > { %v1226_v7 = vsel %vm667_vm2, %v1225_v5, -inf  ;;  %v1768_v6 = vld [vmem:[%s2894_s11 + $0x20] sm:$0xff] }
 0x63b   : > { %1227 = vmax.xlane.f32.xlu1 %v1226_v7  ;;  %v1767_v7 = vld [vmem:[%s2894_s11 + $0x18] sm:$0xff] }
 0x64c   : > { %1239 = vrot.lane.b32.xlu1 %v2646_v23, %s2405_s30  ;;  %s2814_s30 = scalar_lea.hbm %s2899_s16, %s2038_s15 }
 0x650   : > { %1390 = vrot.lane.b32.xlu1 %v2646_v23, %s2406_s29  ;;  %s1861_s29 = scalar_lea.sflag [#allocation7], %s2596_s17 }
 0x6c4   : > { %v1228_v9 = vpop.xlane.xlu1 %1227 }
 0x6c5   : > { %v1229_v10 = vsub.f32 %v1225_v5, %v1228_v9  ;;  %v1769_v5 = vld [vmem:[%s2894_s11 + $0x28] sm:$0xff]  ;;  %v1766_v9 = vld [vmem:[%s2894_s11 + $0x10] sm:$0xff] }
 0x6c7   : > { %v1230_v11 = vmul.f32 1.442695, %v1229_v10  ;;  %v1765_v10 = vld [vmem:[%s2894_s11 + $0x8] sm:$0xff] }
 0x6c8   : > { %v1240_v12 = vpop.permute.xlu1 %1239 }
 0x6c9   : > { %2259 = vpow2.f32 %v1230_v11  ;;  %2129 = vmatpush3.msra.mxu1 %v1240_v12  ;;  %v1764_v11 = vld [vmem:[%s2894_s11] sm:$0xff] }
 0x6ca   : > { %2138 = vmatprep.subr.mxu1 %v2396_v8  ;;  %v2027_v12 = vld [vmem:[%s2893_s10] ss:$0 sm:$0xff] }
 0x6cc   : > { %v1391_v19 = vpop.permute.xlu1 %1390 }
 0x6d6   : > { %v2260_v13 = vpop.eup %2259 }
 0x6d7   : > { %v1232_v14 = vsel %vm667_vm2, %v2260_v13, 0.0 }
 0x6d8   : > { %1233 = vadd.xlane.f32.xlu0 %v1232_v14 }
 0x6ee   : > { %1392 = vrot.lane.b32.xlu0 %v2646_v23, %s2407_s26  ;;  %s2299_s26 = scalar_lea.vmem %s2816_s21, 512 }
 0x6ef   : > { %p2300_p11 = scmp.ne.s32.totalorder %s2816_s21, %s2299_s26 }
 0x6f1   : > { %p2301_p13 = pnand %p2300_p11, %p2932_p12 }
 0x6f3   : > { %p2302_p1 = pneg %p2301_p13 }
 0x761   : > { %v1234_v15 = vpop.xlane.xlu0 %1233 }
 0x762   : > { %2261 = vrcp.f32 %v1234_v15 }
 0x765   : > { %v1393_v18 = vpop.permute.xlu0 %1392 }
 0x76f   : > { %v2262_v16 = vpop.eup %2261 }
 0x770   : > { %v1236_v17 = vmul.f32 %v2262_v16, %v2260_v13 }
 0x772   : > { %2016 = vst.msk [vmem:[%s2672_s20 + $0x10] sm:$0xff] %vm667_vm2, %v1236_v17  ;;  %2131 = vmatmul.mubr.msk.f32.vlgmr.msra.gmra.mxu1 %vm667_vm2, %v1236_v17 }
 0x773   : > { %2139 = vmatpush3.xpose.msk.msra.mxu1 %vm667_vm2, %v1393_v18  ;;  %2140 = vmatprep.mubr.msk.f32.mxu1 %vm2397_vm1, %v2396_v8 }
 0x774   : > { %2148 = vmatprep.subr.mxu1 %v2396_v8 }
 0x776   : > { %2141 = vmatmul.mubr.msk.f32.vlgmr.msra.gmra.mxu1 %vm667_vm2, %v1391_v19 }
 0x777   : > { %2150 = vmatprep.mubr.msk.f32.mxu1 %vm2397_vm1, %v2396_v8  ;;  %2149 = vmatpush3.msra.mxu1 %v1558_v33 }
 0x778   : > { %2164 = vmatprep.subr.mxu1 %v2396_v8 }
 0x832   : > { %v1311_v21 = vpop.f32.mrf.mxu1 }
 0x833   : > { %2136 = vmatmul.mubr.msk.f32.vlgmr.msra.gmra.mxu0 %vm667_vm2, %v1311_v21 }
 0x834   : > { %v2132_v22 = vpop.f32.mrf.mxu1  ;;  %2145 = vmatprep.mubr.msk.f32.mxu0 %vm2397_vm1, %v2396_v8 }
 0x836   : > { %v1464_v24 = vpop.f32.mrf.mxu1 }
 0x837   : > { %v1468_v25 = vmul.f32 0.35355338, %v1464_v24 }
 0x838   : > { %v2142_v26 = vpop.f32.mrf.mxu1 }
 0x839   : > { %v1469_v27 = vsel %vm667_vm2, %v1468_v25, -inf }
 0x83a   : > { %1470 = vmax.xlane.f32.xlu1 %v1469_v27 }
 0x8c3   : > { %v1471_v28 = vpop.xlane.xlu1 %1470 }
 0x8c4   : > { %v1472_v29 = vsub.f32 %v1468_v25, %v1471_v28 }
 0x8c6   : > { %v1473_v30 = vmul.f32 1.442695, %v1472_v29 }
 0x8c8   : > { %2263 = vpow2.f32 %v1473_v30 }
 0x8d5   : > { %v2264_v31 = vpop.eup %2263 }
 0x8d6   : > { %v1475_v32 = vsel %vm667_vm2, %v2264_v31, 0.0 }
 0x8d7   : > { %1476 = vadd.xlane.f32.xlu0 %v1475_v32 }
 0x8ed   : > { %1482 = vrot.lane.b32.xlu0 %v2646_v23, %s2408_s24 }
 0x8f3   : > { %v1385_v34 = vpop.f32.mrf.mxu0 }
 0x8f4   : > { %v1389_v35 = vadd.f32 %v1385_v34, %v1144_v2 }
 0x8f5   : > { %v2137_v36 = vpop.f32.mrf.mxu0 }
 0x960   : > { %v1477_v37 = vpop.xlane.xlu0 %1476 }
 0x961   : > { %2265 = vrcp.f32 %v1477_v37 }
 0x964   : > { %v1483_v38 = vpop.permute.xlu0 %1482 }
 0x965   : > { %2144 = vmatpush3.msra.mxu0 %v1483_v38 }
 0x966   : > { %2153 = vmatprep.subr.mxu0 %v2396_v8 }
 0x96e   : > { %v2266_v39 = vpop.eup %2265 }
 0x96f   : > { %v1479_v40 = vmul.f32 %v2266_v39, %v2264_v31 }
 0x971   : > { %2021 = vst.msk [vmem:[%s2672_s20 + $0x18] sm:$0xff] %vm667_vm2, %v1479_v40  ;;  %2146 = vmatmul.mubr.msk.f32.vlgmr.msra.gmra.mxu0 %vm667_vm2, %v1479_v40  ;;  %s2305_s20 = scalar_lea.vmem %s2304_s18, 1024 }
 0x972   : > { %2161 = vmatprep.mubr.msk.f32.mxu0 %vm2397_vm1, %v2396_v8  ;;  %2154 = vmatpush3.msra.mxu0 %v1674_v54  ;;  %p2307_p5 = scmp.lt.s32.totalorder %s2305_s20, %s2299_s26 }
 0x973   : > { %2155 = vmatprep.subr.mxu0 %v2396_v8 }
 0x974   : > { %p2308_p8 = por %p2307_p5, %p2306_p3 }
 0x976   : > { %p2309_p10 = pnand %p2308_p8, %p2302_p1 }
 0xa31   : > { %v1554_v23 = vpop.f32.mrf.mxu0 }
 0xa32   : > { %2151 = vmatmul.mubr.msk.f32.vlgmr.msra.gmra.mxu1 %vm667_vm2, %v1554_v23 }
 0xa33   : > { %v2147_v41 = vpop.f32.mrf.mxu0  ;;  %2180 = vmatprep.mubr.msk.f32.mxu1 %vm2397_vm1, %v2396_v8  ;;  %2165 = vmatpush3.msra.mxu1 %v1771_v3 }
 0xa34   : > { %2166 = vmatprep.subr.mxu1 %v2396_v8 }
 0xa35   : > { %2167 = vmatpush3.msra.mxu1 %v1770_v4 }
 0xa36   : > { %2168 = vmatprep.subr.mxu1 %v2396_v8 }
 0xa37   : > { %2169 = vmatpush3.msra.mxu1 %v1769_v5 }
 0xa38   : > { %2170 = vmatprep.subr.mxu1 %v2396_v8 }
 0xa39   : > { %2171 = vmatpush3.msra.mxu1 %v1768_v6 }
 0xa3a   : > { %2172 = vmatprep.subr.mxu1 %v2396_v8 }
 0xa3b   : > { %2173 = vmatpush3.msra.mxu1 %v1767_v7 }
 0xa3c   : > { %2174 = vmatprep.subr.mxu1 %v2396_v8 }
 0xa3d   : > { %2175 = vmatpush3.msra.mxu1 %v1766_v9 }
 0xa3e   : > { %2176 = vmatprep.subr.mxu1 %v2396_v8 }
 0xa3f   : > { %2177 = vmatpush3.msra.mxu1 %v1765_v10 }
 0xa40   : > { %2178 = vmatprep.subr.mxu1 %v2396_v8 }
 0xa41   : > { %2179 = vmatpush3.msra.mxu1 %v1764_v11 }
 0xaf2   : > { %v1628_v42 = vpop.f32.mrf.mxu1 }
 0xaf3   : > { %v1632_v43 = vadd.f32 %v1628_v42, %v1389_v35 }
 0xaf4   : > { %v2152_v45 = vpop.f32.mrf.mxu1 }
 0xaf5   : > { %v1633_v46 = vadd.f32 %v1632_v43, %v2606_v0  ;;  %v1673_v0 = vld [vmem:[%s2892_s9 + $0x10] sm:$0xff] }
 0xaf6   : > { %2156 = vmatpush3.msra.mxu0 %v1673_v0 }
 0xaf7   : > { %v2747_v47 = vadd.f32 %v2024_v44, %v1633_v46  ;;  %2157 = vmatprep.subr.mxu0 %v2396_v8 }
 0xaf8   : > { %2158 = vmatpush3.msra.mxu0 %v1672_v55 }
 0xaf9   : > { %v1644_v48 = vsel %vm551_vm0, %v2747_v47, 0.0  ;;  %2159 = vmatprep.subr.mxu0 %v2396_v8 }
 0xafa   : > { %1645 = vadd.xlane.f32.xlu1 %v1644_v48  ;;  %2160 = vmatpush3.msra.mxu0 %v1671_v56 }
 0xb83   : > { %v1646_v49 = vpop.xlane.xlu1 %1645 }
 0xb84   : > { %v1647_v50 = vmul.f32 0.03125, %v1646_v49 }
 0xb86   : > { %v1648_v51 = vsub.f32 %v2747_v47, %v1647_v50 }
 0xb88   : > { %v1649_v52 = vmul.f32 %v1648_v51, %v1648_v51 }
 0xb8a   : > { %v1650_v53 = vsel %vm551_vm0, %v1649_v52, 0.0 }
 0xb8b   : > { %1651 = vadd.xlane.f32.xlu1 %v1650_v53 }
 0xc14   : > { %v1652_v57 = vpop.xlane.xlu1 %1651 }
 0xc15   : > { %v1653_v58 = vmul.f32 0.03125, %v1652_v57 }
 0xc17   : > { %v1654_v59 = vadd.f32 1e-06, %v1653_v58 }
 0xc19   : > { %2267 = vrsqrt.f32 %v1654_v59 }
 0xc26   : > { %v2268_v60 = vpop.eup %2267 }
 0xc27   : > { %v1656_v62 = vmul.f32 %v2268_v60, %v1648_v51 }
 0xc29   : > { %v1663_v1 = vmul.f32 %v2025_v61, %v1656_v62 }
 0xc2b   : > { %v1670_v2 = vadd.f32 %v2026_v63, %v1663_v1 }
 0xc2d   : > { %2162 = vmatmul.mubr.msk.f32.vlgmr.msra.gmra.mxu0 %vm551_vm0, %v1670_v2 }
 0xced   : > { %v1751_v13 = vpop.f32.mrf.mxu0 }
 0xcee   : > { %v1752_v14 = vadd.f32 %v2027_v12, %v1751_v13 }
 0xcef   : > { %v2163_v15 = vpop.f32.mrf.mxu0 }
 0xcf0   : > { %v1756_v16 = vmul.f32 %v1752_v14, %v1752_v14  ;;  %v1755_v8 = vmul.f32 0.5, %v1752_v14 }
 0xcf2   : > { %v1757_v17 = vmul.f32 %v1756_v16, %v1752_v14 }
 0xcf4   : > { %v1758_v18 = vmul.f32 0.044715, %v1757_v17 }
 0xcf6   : > { %v1759_v19 = vadd.f32 %v1758_v18, %v1752_v14 }
 0xcf8   : > { %v1760_v20 = vmul.f32 0.7978846, %v1759_v19 }
 0xcfa   : > { %2269 = vtanh.f32 %v1760_v20 }
 0xd07   : > { %v2270_v21 = vpop.eup %2269 }
 0xd08   : > { %v1762_v22 = vadd.f32 1.0, %v2270_v21 }
 0xd0a   : > { %v1763_v24 = vmul.f32 %v1762_v22, %v1755_v8 }
 0xd0c   : > { %2181 = vmatmul.mubr.msk.f32.vlgmr.msra.gmra.mxu1 %vm1779_vm3, %v1763_v24 }
 0xd0d   : > { %2312 = shalt.err (!%p2309_p10)
}
 0xd0e   : > { %s2313_s24 = scalar_lea.hbm %s2814_s30, 512  ;;  %s2317_s13 = scalar_lea.hbm %s2899_s16, 1024 }
 0xd0f   : > { %p2314_p2 = scmp.ne.s32.totalorder %s2814_s30, %s2313_s24  ;;  %p2318_p7 = scmp.lt.s32.totalorder %s2814_s30, %s2899_s16 }
 0xd10   : > { %p2319_p0 = scmp.lt.s32.totalorder %s2317_s13, %s2313_s24 }
 0xd11   : > { %p2315_p4 = pnand %p2314_p2, %p2932_p12 }
 0xd12   : > { %p2320_p6 = por %p2319_p0, %p2318_p7 }
 0xd13   : > { %p2316_p9 = pneg %p2315_p4 }
 0xd15   : > { %p2321_p11 = pnand %p2320_p6, %p2316_p9 }
 0xd17   : > { %2324 = shalt.err (!%p2321_p11)
}
 0xd18   : > { %s2410_s26 = smov 128   ;;  %s2411_s18 = smov 8  }
 0xd19   : > { %2186 = dma.vmem_to_hbm [thread:$0]  (%p2932_p12), %s2816_s21, 512, %s2814_s30, %s1861_s29, %s2410_s26, %s2410_s26, %s2411_s18  }
 0xd1a   : > { %s2933_s15 = sld [smem:[#allocation20_spill]]  ;;  %s2033_s24 = sshll.u32 %s2519_s14, 7 }
 0xd1b   : > { %s540_s13 = scalar_lea.vmem [#allocation5], %s1998_s12  ;;  %s2934_s2 = sld [smem:[#allocation21_spill]] }
 0xd1c   : > { %s1874_s25 = sshll.u32 %s540_s13, 4  ;;  %s1856_s21 = scalar_lea.sflag [#allocation4], %s2596_s17  ;;  %s1875_s25 = int_to_ptr.vmem [resolvable:$true] %s1874_s25 }
 0xd1d   : > { %s2325_s30 = scalar_lea.vmem %s1875_s25, 128  ;;  %s2412_s14 = smov [#allocation5]  }
 0xd1e   : > { %p2326_p13 = scmp.ne.s32.totalorder %s1875_s25, %s2325_s30  ;;  %s2329_s12 = sshll.u32 %s2412_s14, 4  ;;  %s2330_s12 = int_to_ptr.vmem [resolvable:$false] %s2329_s12 }
 0xd1f   : > { %s2331_s29 = scalar_lea.vmem %s2330_s12, 256  ;;  %p2332_p5 = scmp.lt.s32.totalorder %s1875_s25, %s2330_s12 }
 0xd20   : > { %v2029_v25 = vld [vmem:[%s2933_s15] ss:$0 sm:$0xff]  ;;  %p2327_p1 = pnand %p2326_p13, %p2932_p12  ;;  %p2333_p8 = scmp.lt.s32.totalorder %s2331_s29, %s2325_s30 }
 0xd21   : > { %s1872_s3 = scalar_lea.hbm %s2934_s2, %s2033_s24 }
 0xd22   : > { %p2328_p3 = pneg %p2327_p1  ;;  %p2334_p10 = por %p2333_p8, %p2332_p5 }
 0xd24   : > { %p2335_p2 = pnand %p2334_p10, %p2328_p3 }
 0xdcc   : > { %v1849_v26 = vpop.f32.mrf.mxu1 }
 0xdcd   : > { %v1850_v27 = vadd.f32 %v2029_v25, %v1849_v26 }
 0xdce   : > { %v2182_v28 = vpop.f32.mrf.mxu1 }
 0xdcf   : > { %v1853_v29 = vadd.f32 %v1850_v27, %v2747_v47 }
 0xdd1   : > { %1854 = vst.msk [vmem:[%s540_s13] sm:$0xff] %vm551_vm0, %v1853_v29 }
 0xdd2   : > { %2338 = shalt.err (!%p2335_p2)
}
 0xdd3   : > { %s2339_s1 = scalar_lea.hbm %s1872_s3, 128  ;;  %s2343_s18 = scalar_lea.hbm %s2934_s2, 256 }
 0xdd4   : > { %p2340_p4 = scmp.ne.s32.totalorder %s1872_s3, %s2339_s1  ;;  %p2344_p0 = scmp.lt.s32.totalorder %s1872_s3, %s2934_s2 }
 0xdd5   : > { %p2345_p6 = scmp.lt.s32.totalorder %s2343_s18, %s2339_s1 }
 0xdd6   : > { %p2341_p9 = pnand %p2340_p4, %p2932_p12 }
 0xdd7   : > { %p2346_p11 = por %p2345_p6, %p2344_p0 }
 0xdd8   : > { %p2342_p7 = pneg %p2341_p9 }
 0xdda   : > { %p2347_p13 = pnand %p2346_p11, %p2342_p7 }
 0xddc   : > { %2350 = shalt.err (!%p2347_p13)
}
 0xddd   : > { %2185 = dma.vmem_to_hbm [thread:$0]  (%p2932_p12), %s1875_s25, 128, %s1872_s3, %s1856_s21  }
 0xdde PF: > { %s2935_s15 = sld [smem:[#allocation11_spill]]  ;;  %p2938_p3 = scmp.ge.s32.totalorder %s2393_s23, 2 }
 0xddf   : > { %s2936_s24 = sld [smem:[#allocation15_spill]] }
 0xde4   : > { %s1902_s13 = sand.u32 1, %s2935_s15  }
 0xde5   : > { %p2937_p1 = scmp.ne.s32.totalorder %s2936_s24, 0  ;;  %s1903_s27 = scalar_lea.sflag [#allocation4], %s1902_s13 }
 0xde7   : > { %p2194_p5 = pnand %p2938_p3, %p2937_p1 }
 0xde9   : > { %p2195_p8 = pneg %p2194_p5 }
 0xdeb   : > { %2372 = dma.done.wait (%p2195_p8), %s1903_s27, 128  }
 0xdec   : > { %2374 = vsyncadd (%p2195_p8), %s1903_s27, 4294967168  ;;  %s1912_s30 = scalar_lea.sflag [#allocation7], %s1902_s13 }
 0xded   : > { %2376 = dma.done.wait (%p2195_p8), %s1912_s30, 512  }
 0xdee   : > { %2378 = vsyncadd (%p2195_p8), %s1912_s30, 4294966784  ;;  %s2939_s23 = sld [smem:[#allocation13_spill]]  ;;  %s2942_s21 = smov %s2385_s22 }
 0xdef   : > { %s2940_s14 = sld [smem:[#allocation12_spill]] }
 0xdf0   : > { %s2941_s13 = sld [smem:[#allocation14_spill]] }
 0xdf4   : > { %p33_p12 = scmp.ge.s32.totalorder %s2939_s23, 4  }
 0xdf5   : > { %s2943_s22 = smov %s2940_s14 }
 0xdf6   :  { %35 = sbr.rel (!%p33_p12) target bundleno = 14 (0xe), region = 145 }
 0xdfb   :  { %1917 = vsyncpa [#allocation3], 1 }
 0xdfc   :  { %1919 = vsyncpa [#allocation3 + $0x1], 1 }
 0xdfd   :  { %1920 = vsyncpa [#allocation4], 1 }
 0xdfe   :  { %1922 = vsyncpa [#allocation4 + $0x1], 1 }
 0xdff   :  { %1923 = vsyncpa [#allocation7], 1 }
 0xe00   :  { %1925 = vsyncpa [#allocation7 + $0x1], 1 }

</bundles_post_ra>
